<compile_context>
chip_gen: v6e
topology: v6e:2x2x1
jax: 0.10.0
libtpu: 0.0.40
codegen_flags: <defaults>
</compile_context>

<pallas_src>
import functools

import jax
import jax.numpy as jnp
from jax.experimental import pallas as pl
from jax.experimental.pallas import tpu as pltpu


def _cdiv(a, b):
    return -(-a // b)


def _round_up(a, b):
    return _cdiv(a, b) * b


def _pick_tile_c(c, rows_cap):
    """Channel tile: full c if c <= 8, else a multiple of 8 that is <= c,
    <= rows_cap, and (for c >= 16) <= ~c/2 so the grid has >= 2 steps."""
    if c <= 8:
        return int(c)
    tile_c = min((c // 8) * 8, max(8, (rows_cap // 8) * 8))
    if c >= 16:
        tile_c = min(tile_c, _round_up(_cdiv(c, 2), 8))
    return int(max(8, tile_c))


# ---------------------------------------------------------------------------
# Kernel 1: full spatial row resident per channel tile (the common case).
# ---------------------------------------------------------------------------
def _norm_kernel(x_ref, o_ref, *, n_valid):
    # x_ref: (tile_c, n) -- one full spatial row per channel, rows independent.
    x = x_ref[...].astype(jnp.float32)
    mean = jnp.sum(x, axis=-1, keepdims=True) * (1.0 / n_valid)
    diff = x - mean
    var = jnp.sum(diff * diff, axis=-1, keepdims=True) * (1.0 / (n_valid - 1))
    inv = pl.reciprocal(jnp.sqrt(var) + 1e-7, approx=False)
    o_ref[...] = (diff * inv).astype(o_ref.dtype)


# ---------------------------------------------------------------------------
# Kernel 2: spatially chunked two-phase variant for very large h*w.
# Grid = (channel_tiles, 2*kt).  k in [0, kt): accumulate sum / sum-of-squares
# into VMEM scratch; k == kt: finalize mean and 1/(std+eps); k in [kt, 2*kt):
# normalize each spatial chunk and write it out.
# ---------------------------------------------------------------------------
def _norm_chunked_kernel(x_ref, o_ref, sum_ref, sq_ref, *, n_valid, tile_n, kt):
    k = pl.program_id(1)
    x = x_ref[...].astype(jnp.float32)
    needs_mask = (n_valid % tile_n) != 0  # static: trailing spatial chunk ragged?

    @pl.when(k == 0)
    def _():
        sum_ref[...] = jnp.zeros_like(sum_ref)
        sq_ref[...] = jnp.zeros_like(sq_ref)

    @pl.when(k < kt)
    def _():
        if needs_mask:
            col = jax.lax.broadcasted_iota(jnp.int32, x.shape, 1) + k * tile_n
            xm = jnp.where(col < n_valid, x, 0.0)
        else:
            xm = x
        sum_ref[...] += jnp.sum(xm, axis=-1, keepdims=True)
        sq_ref[...] += jnp.sum(xm * xm, axis=-1, keepdims=True)

    @pl.when(k == kt)
    def _():
        mean = sum_ref[...] * (1.0 / n_valid)
        var = (sq_ref[...] - n_valid * mean * mean) * (1.0 / (n_valid - 1))
        var = jnp.maximum(var, 0.0)  # guard tiny negative round-off
        sum_ref[...] = mean
        sq_ref[...] = pl.reciprocal(jnp.sqrt(var) + 1e-7, approx=False)

    @pl.when(k >= kt)
    def _():
        # sum_ref now holds mean, sq_ref holds 1/(std+eps).
        o_ref[...] = ((x - sum_ref[...]) * sq_ref[...]).astype(o_ref.dtype)


# ---------------------------------------------------------------------------
# Wrapper
# ---------------------------------------------------------------------------
def norm_layer(x, *, force_spatial_chunking=False, spatial_tile=None):
    """Pallas TPU equivalent of normLayer.forward.  x: (1, c, h, w)."""
    b, c, h, w = x.shape
    assert b == 1
    n = h * w
    assert n > 1, "unbiased std needs at least 2 spatial elements per channel"

    x2d = x.reshape(c, n)  # contiguous reshape: no HBM copy
    itemsize = jnp.dtype(x.dtype).itemsize

    # ---- generation-aware VMEM budget -------------------------------------
    try:
        vmem_cap = int(pltpu.get_tpu_info().vmem_capacity_bytes)
    except Exception:  # pragma: no cover - conservative fallback
        vmem_cap = 64 * 1024 * 1024
    # vmem_capacity_bytes may be per-chip on dual-TC parts; smallest per-TC
    # VMEM among supported generations is 64 MiB (v7x), so never declare more
    # than ~85% of that.
    vmem_limit = int(min(vmem_cap, 64 * 1024 * 1024) * 0.85)
    budget = int(vmem_limit * 0.8)  # headroom for Mosaic-internal scratch

    # Per channel-row footprint of the single-block path: input + output tiles
    # (each double-buffered) plus ~4 f32 tile-sized temporaries in the body.
    n_lane = _round_up(n, 128)  # lane padding of the VMEM tile
    bytes_per_row = n_lane * (2 * 2 * itemsize + 4 * 4)

    use_chunked = force_spatial_chunking or (bytes_per_row * min(8, c) > budget)

    if not use_chunked:
        tile_c = _pick_tile_c(c, budget // bytes_per_row)
        grid_c = _cdiv(c, tile_c)
        out2d = pl.pallas_call(
            functools.partial(_norm_kernel, n_valid=n),
            out_shape=jax.ShapeDtypeStruct((c, n), x.dtype),
            grid_spec=pltpu.PrefetchScalarGridSpec(
                num_scalar_prefetch=0,
                grid=(grid_c,),
                in_specs=[pl.BlockSpec((tile_c, n), lambda i: (i, 0))],
                out_specs=pl.BlockSpec((tile_c, n), lambda i: (i, 0)),
            ),
            compiler_params=pltpu.CompilerParams(
                dimension_semantics=("parallel",),
                vmem_limit_bytes=vmem_limit,
            ),
        )(x2d)
    else:
        # Spatial-chunked sum / sum-of-squares accumulation path.
        tile_c = _pick_tile_c(c, 128)
        per_elem = 2 * 2 * itemsize + 3 * 4  # in/out double-buffered + f32 temps
        if spatial_tile is not None:
            tile_n = int(spatial_tile)
        else:
            tile_n = (budget // (tile_c * per_elem)) // 128 * 128
        tile_n = int(max(128, min(tile_n, _round_up(n, 128))))
        kt = _cdiv(n, tile_n)
        grid_c = _cdiv(c, tile_c)

        out2d = pl.pallas_call(
            functools.partial(_norm_chunked_kernel, n_valid=n,
                              tile_n=tile_n, kt=kt),
            out_shape=jax.ShapeDtypeStruct((c, n), x.dtype),
            grid_spec=pltpu.PrefetchScalarGridSpec(
                num_scalar_prefetch=0,
                grid=(grid_c, 2 * kt),
                in_specs=[pl.BlockSpec(
                    (tile_c, tile_n), lambda i, k: (i, k % kt))],
                out_specs=pl.BlockSpec(
                    (tile_c, tile_n), lambda i, k: (i, jnp.maximum(k - kt, 0))),
                scratch_shapes=[
                    pltpu.VMEM((tile_c, 1), jnp.float32),  # running sum -> mean
                    pltpu.VMEM((tile_c, 1), jnp.float32),  # running sumsq -> 1/(std+eps)
                ],
            ),
            compiler_params=pltpu.CompilerParams(
                dimension_semantics=("parallel", "arbitrary"),
                vmem_limit_bytes=vmem_limit,
            ),
        )(x2d)

    return out2d.reshape(b, c, h, w)


if __name__ == "__main__":
    def _reference(x):
        _, c, _, _ = x.shape
        xf = x.reshape(c, -1).astype(jnp.float32)
        mean = xf.mean(-1)
        std = jnp.std(xf, axis=-1, ddof=1)
        y = (x.astype(jnp.float32) - mean.reshape(1, c, 1, 1)) \
            / (std + 1e-7).reshape(1, c, 1, 1)
        return y.astype(x.dtype)

    key = jax.random.PRNGKey(0)
    k1, k2, k3 = jax.random.split(key, 3)

    # 1) main single-block path
    x = jax.random.normal(k1, (1, 4, 16, 16), dtype=jnp.float32) * 3.0 + 1.5
    out = norm_layer(x)
    jax.block_until_ready(out)
    assert jnp.allclose(out, _reference(x), atol=1e-5, rtol=1e-5)

    # 2) non-128-aligned spatial size and non-multiple-of-8 channel count
    x2 = jax.random.normal(k2, (1, 5, 7, 9), dtype=jnp.float32) * 2.0 - 0.5
    out2 = norm_layer(x2)
    jax.block_until_ready(out2)
    assert jnp.allclose(out2, _reference(x2), atol=1e-5, rtol=1e-5)

    # 3) spatial-chunked accumulation path (forced with a small tile so it is
    #    exercised at test scale; normally used only when h*w is too large for
    #    a single VMEM-resident row block)
    x3 = jax.random.normal(k3, (1, 8, 16, 20), dtype=jnp.float32) * 1.7 + 0.3
    out3 = norm_layer(x3, force_spatial_chunking=True, spatial_tile=128)
    jax.block_until_ready(out3)
    assert jnp.allclose(out3, _reference(x3), atol=1e-5, rtol=1e-5)

    print("KERNEL_OK")
</pallas_src>

<mosaic_0001>
module attributes {stable_mosaic.version = 11 : i64} {
  func.func @_norm_kernel(%arg0: i32, %arg1: memref<4x256xf32, #tpu.memory_space<vmem>>, %arg2: memref<4x256xf32, #tpu.memory_space<vmem>>) attributes {dimension_semantics = [#tpu.dimension_semantics<parallel>], iteration_bounds = array<i64: 1>, scalar_prefetch = 0 : i64, scratch_operands = 0 : i64, tpu.core_type = #tpu.core_type<tc>, window_params = [{transform_indices = @transform_0, window_bounds = array<i64: 4, 256>}, {transform_indices = @transform_1, window_bounds = array<i64: 4, 256>}]} {
    %c0 = arith.constant 0 : index
    %c0_0 = arith.constant 0 : index
    %0 = vector.load %arg1[%c0, %c0_0] : memref<4x256xf32, #tpu.memory_space<vmem>>, vector<4x256xf32>
    %cst = arith.constant dense<0.000000e+00> : vector<4xf32>
    %1 = vector.multi_reduction <add>, %0, %cst [1] : vector<4x256xf32> to vector<4xf32>
    %2 = vector.shape_cast %1 : vector<4xf32> to vector<4x1xf32>
    %cst_1 = arith.constant 3.906250e-03 : f32
    %3 = vector.broadcast %cst_1 : f32 to vector<4x1xf32>
    %4 = arith.mulf %2, %3 : vector<4x1xf32>
    %5 = vector.broadcast %4 : vector<4x1xf32> to vector<4x256xf32>
    %6 = arith.subf %0, %5 : vector<4x256xf32>
    %7 = arith.mulf %6, %6 : vector<4x256xf32>
    %cst_2 = arith.constant dense<0.000000e+00> : vector<4xf32>
    %8 = vector.multi_reduction <add>, %7, %cst_2 [1] : vector<4x256xf32> to vector<4xf32>
    %9 = vector.shape_cast %8 : vector<4xf32> to vector<4x1xf32>
    %cst_3 = arith.constant 0.00392156886 : f32
    %10 = vector.broadcast %cst_3 : f32 to vector<4x1xf32>
    %11 = arith.mulf %9, %10 : vector<4x1xf32>
    %12 = math.sqrt %11 : vector<4x1xf32>
    %cst_4 = arith.constant 1.000000e-07 : f32
    %13 = vector.broadcast %cst_4 : f32 to vector<4x1xf32>
    %14 = arith.addf %12, %13 : vector<4x1xf32>
    %15 = tpu.reciprocal %14 : vector<4x1xf32> -> vector<4x1xf32>
    %16 = vector.broadcast %15 : vector<4x1xf32> to vector<4x256xf32>
    %17 = arith.mulf %6, %16 : vector<4x256xf32>
    %c0_5 = arith.constant 0 : index
    %c0_6 = arith.constant 0 : index
    %18 = vector.load %arg2[%c0_5, %c0_6] : memref<4x256xf32, #tpu.memory_space<vmem>>, vector<4x256xf32>
    tpu.vector_store %arg2[%c0_5, %c0_6], %17 {strides = array<i32>} : memref<4x256xf32, #tpu.memory_space<vmem>>, vector<4x256xf32>,
    return
  }
  func.func @transform_0(%arg0: i32) -> (i32, i32) {
    %c0_i32 = arith.constant 0 : i32
    %c0_i32_0 = arith.constant 0 : i32
    return %arg0, %c0_i32 : i32, i32
  }
  func.func @transform_1(%arg0: i32) -> (i32, i32) {
    %c0_i32 = arith.constant 0 : i32
    %c0_i32_0 = arith.constant 0 : i32
    return %arg0, %c0_i32 : i32, i32
  }
}

</mosaic_0001>

<bundles_post_ra>
// kernel: tpu_custom_call.1
= control target key start
LH: loop header
LB: loop body
LE: loop exit
PB: predicated region body
PF: predicated region fallthrough
CT: control target
= control target key end

     0   :  { %6 = vsyncpa [#allocation3], 0  ;;  %s162_s0 = inlined_call_operand.hbm [shape: f32[4,256], index: 0, kind: input, shape index: {}]   ;;  %s163_s1 = inlined_call_operand.hbm [shape: f32[4,256], index: 1, kind: output, shape index: {}]  }
   0x1   :  { %7 = vsyncpa [#allocation4], 0  ;;  %s139_s6 = smov [#allocation2]  }
   0x2   :  { %s14_s7 = sshll.u32 %s139_s6, 4  ;;  %s15_s7 = int_to_ptr.vmem [resolvable:$true] %s14_s7 }
   0x3   :  { %s103_s8 = scalar_lea.vmem %s15_s7, 128  ;;  %p108_p1 = scmp.lt.s32.totalorder %s15_s7, %s15_s7 }
   0x4   :  { %p104_p0 = scmp.ne.s32.totalorder %s15_s7, %s103_s8  ;;  %p109_p2 = scmp.lt.s32.totalorder %s103_s8, %s103_s8 }
   0x6   :  { %p110_p3 = por %p109_p2, %p108_p1 }
   0x8   :  { %p111_p4 = pnand %p110_p3, %p104_p0 }
   0xa   :  { %114 = shalt.err (!%p111_p4)
}
   0xb   :  { %17 = dma.hbm_to_vmem [thread:$0]  %s162_s0, 128, %s15_s7, [#allocation3]  }
   0xc   :  { %135 = dma.done.wait [#allocation3], 128  }
   0xd   :  { %136 = vsyncadd [#allocation3], 4294967168  ;;  %vm25_vm0 = vcmask 1043456   ;;  %v21_v0 = vld [vmem:[#allocation2] sm:$0xff]  ;;  %v140_v5 = vmov 839922192   ;;  %v36_v7 = vlaneseq }
   0xe   :  { %v23_v1 = vcombine.high %v21_v0, %v21_v0  ;;  %v26_v2 = vsel %vm25_vm0, %v21_v0, 0.0  ;;  %v34_v6 = vunpack.c.l.s4 %v140_v5  ;;  %s141_s0 = smov [#allocation5]  }
   0xf   :  { %v37_v9 = vshrl.u32 %v36_v7, 7  ;;  %s78_s11 = sshll.u32 %s141_s0, 4  ;;  %s79_s11 = int_to_ptr.vmem [resolvable:$true] %s78_s11 }
  0x10   :  { %v27_v3 = vsel %vm25_vm0, %v23_v1, 0.0  ;;  %v35_v8 = vunpack.c.0.s8 %v34_v6  ;;  %s115_s12 = scalar_lea.vmem %s79_s11, 128  ;;  %p120_p6 = scmp.lt.s32.totalorder %s79_s11, %s79_s11 }
  0x11   :  { %v28_v4 = vadd.f32 %v27_v3, %v26_v2  ;;  %p116_p5 = scmp.ne.s32.totalorder %s79_s11, %s115_s12  ;;  %p121_p7 = scmp.lt.s32.totalorder %s115_s12, %s115_s12 }
  0x12   :  { %v38_v10 = vsub.s32 %v35_v8, %v37_v9 }
  0x13   :  { %29 = vadd.xlane.f32.xlu0 %v28_v4  ;;  %p122_p8 = por %p121_p7, %p120_p6 }
  0x15   :  { %p123_p9 = pnand %p122_p8, %p116_p5 }
  0x9c   :  { %v30_v11 = vpop.xlane.xlu0 %29 }
  0x9d   :  { %v31_v12 = vmul.f32 0.00390625, %v30_v11 }
  0x9f   :  { %v39_v13 = vrot.slane %v31_v12, %v38_v10 }
  0xa1   :  { %v41_v14 = vsub.f32 %v21_v0, %v39_v13 }
  0xa3   :  { %v42_v15 = vmul.f32 %v41_v14, %v41_v14 }
  0xa5   :  { %v44_v16 = vcombine.high %v42_v15, %v42_v15  ;;  %v46_v17 = vsel %vm25_vm0, %v42_v15, 0.0 }
  0xa7   :  { %v47_v18 = vsel %vm25_vm0, %v44_v16, 0.0 }
  0xa8   :  { %v48_v19 = vadd.f32 %v47_v18, %v46_v17 }
  0xaa   :  { %49 = vadd.xlane.f32.xlu0 %v48_v19 }
 0x133   :  { %v50_v20 = vpop.xlane.xlu0 %49 }
 0x134   :  { %v51_v21 = vmul.f32 0.003921569, %v50_v20 }
 0x136   :  { %91 = vrsqrt.f32 %v51_v21  ;;  %vm54_vm1 = vcmp.eq.f32.partialorder %v51_v21, inf  ;;  %v57_v24 = vand.u32 2147483648, %v51_v21  ;;  %vm56_vm2 = vcmp.eq.f32.partialorder %v51_v21, 0.0 }
 0x143   :  { %v92_v22 = vpop.eup %91 }
 0x144   :  { %v53_v23 = vmul.f32 %v92_v22, %v51_v21 }
 0x146   :  { %v55_v25 = vsel %vm54_vm1, %v51_v21, %v53_v23 }
 0x147   :  { %v58_v26 = vsel %vm56_vm2, %v57_v24, %v55_v25 }
 0x148   :  { %v59_v27 = vadd.f32 1e-07, %v58_v26 }
 0x14a   :  { %93 = vrcp.f32 %v59_v27 }
 0x157   :  { %v94_v28 = vpop.eup %93 }
 0x158   :  { %v68_v29 = vrot.slane %v94_v28, %v38_v10 }
 0x15a   :  { %v70_v30 = vmul.f32 %v68_v29, %v41_v14 }
 0x15c   :  { %71 = vst [vmem:[#allocation5] sm:$0xff] %v70_v30 }
 0x15d   :  { %126 = shalt.err (!%p123_p9)
}
 0x15e   :  { %81 = dma.vmem_to_hbm [thread:$0]  %s79_s11, 128, %s163_s1, [#allocation4]  }
 0x15f   :  { %137 = dma.done.wait [#allocation4], 128  }
 0x160   :  { %138 = vsyncadd [#allocation4], 4294967168 }
 0x161   :  { %85 = vsyncpa [#allocation3], 1 }
 0x162   :  { %86 = vsyncpa [#allocation4], 1 }

</bundles_post_ra>
